<compile_context>
chip_gen: v7x
topology: tpu7x:2x2x1
jax: 0.10.0
libtpu: 0.0.40
codegen_flags: <defaults>
</compile_context>

<pallas_src>
import functools

import jax
import jax.numpy as jnp
from jax.experimental import pallas as pl
from jax.experimental.pallas import tpu as pltpu


def _round_up(v, m):
    return (v + m - 1) // m * m


def _itemsize(dt):
    return jnp.dtype(dt).itemsize


def _vmem_capacity_bytes():
    """Best-effort per-core VMEM capacity; conservative fallback (v7x = 64 MiB)."""
    try:
        info = pltpu.get_tpu_info()
        cap = getattr(info, "vmem_capacity_bytes", None)
        if cap:
            return int(cap)
    except Exception:
        pass
    return 64 * 1024 * 1024


def _footprint_bytes(tm, C, r2, x_bytes, c_bytes, o_bytes):
    """Rough VMEM footprint estimate used to pick the token tile size."""
    resident = (C * 3 * C + C * r2 + r2 * 2 * C) * c_bytes + 3 * C * 4
    tiles = 2 * tm * C * x_bytes + 2 * tm * 3 * C * o_bytes   # double-buffered x / out
    temps = tm * (3 * C + 2 * C) * 4 + tm * C * c_bytes       # f32 qkv/upd + cast x
    return resident + tiles + temps


def _lora_qkv_kernel(x_ref, w_ref, b_ref, a_ref, bqv_ref, o_ref, *, C, compute_dtype):
    """One token tile: fused qkv projection + packed rank-r LoRA q/v update.

    x:    (tm, C)    original dtype; cast to compute_dtype in-kernel (VPU, hidden)
    w:    (C, 3C)    Wqkv^T, grid-invariant (resident)
    b:    (1, 3C)    bias, f32
    a:    (C, 2r)    [Aq^T | Av^T] packed
    bqv:  (2r, 2C)   rows [:r] = Bq^T -> q cols, rows [r:] = Bv^T -> v cols
    o:    (tm, 3C)   one lane-dense full-tile store
    """
    x = x_ref[...].astype(compute_dtype)

    # Main projection with f32 MXU accumulation + f32 bias add.
    qkv = jnp.dot(x, w_ref[...], preferred_element_type=jnp.float32) + b_ref[...]

    # Both rank-r LoRA "A" projections in one skinny matmul, then one packed
    # (2r, 2C) "B" matmul producing [q-update | v-update] (no zero columns).
    ah = jnp.dot(x, a_ref[...], preferred_element_type=jnp.float32)        # (tm, 2r)
    upd = jnp.dot(ah.astype(bqv_ref.dtype), bqv_ref[...],
                  preferred_element_type=jnp.float32)                      # (tm, 2C)

    out = jnp.concatenate(
        [qkv[:, :C] + upd[:, :C],        # q  (+ LoRA q update)
         qkv[:, C:2 * C],                # k  (unchanged)
         qkv[:, 2 * C:] + upd[:, C:]],   # v  (+ LoRA v update)
        axis=1)
    o_ref[...] = out.astype(o_ref.dtype)


def pack_lora_qkv_weights(wqkv_t, bqkv, aq_t, bq_t, av_t, bv_t,
                          compute_dtype=jnp.bfloat16):
    """Pack / cast the fixed weights once; reuse across forward calls.

    wqkv_t: (C, 3C)  aq_t/av_t: (C, r)  bq_t/bv_t: (r, C)  bqkv: (3C,)
    Returns (w, bias, a_pack, b_pack) ready for lora_qkv_packed().
    """
    C = wqkv_t.shape[0]
    r = aq_t.shape[1]
    w = wqkv_t.astype(compute_dtype)                                       # (C, 3C)
    bias = bqkv.reshape(1, 3 * C).astype(jnp.float32)                      # (1, 3C)
    a_pack = jnp.concatenate([aq_t, av_t], axis=1).astype(compute_dtype)   # (C, 2r)
    zeros = jnp.zeros((r, C), dtype=compute_dtype)
    b_pack = jnp.concatenate([                                             # (2r, 2C)
        jnp.concatenate([bq_t.astype(compute_dtype), zeros], axis=1),      # -> q cols
        jnp.concatenate([zeros, bv_t.astype(compute_dtype)], axis=1),      # -> v cols
    ], axis=0)
    return w, bias, a_pack, b_pack


def lora_qkv_packed(x, w, bias, a_pack, b_pack, *, tm=512,
                    compute_dtype=jnp.bfloat16, out_dtype=None):
    """Fused LoRA-qkv forward on pre-packed weights. x: (B, N, C) -> (B, N, 3C)."""
    B, N, C = x.shape
    assert w.shape == (C, 3 * C)
    r2 = a_pack.shape[1]                      # 2 * rank
    M = B * N
    out_dtype = compute_dtype if out_dtype is None else out_dtype

    x_bytes = _itemsize(x.dtype)
    c_bytes = _itemsize(compute_dtype)
    o_bytes = _itemsize(out_dtype)

    # --- VMEM budget: use what the chip has, never over-commit (v7x: 64 MiB/TC).
    vmem_budget = int(_vmem_capacity_bytes() * 0.75)

    # --- pick the token tile: as big as fits, padded to a multiple of 8.
    tm = max(8, min(int(tm), _round_up(M, 8)))
    tm = _round_up(tm, 8)
    while tm > 8 and _footprint_bytes(tm, C, r2, x_bytes, c_bytes, o_bytes) > vmem_budget:
        tm = max(8, _round_up(tm // 2, 8))
    # Keep >= 2 grid steps when there is enough work (v7x has 2 TensorCores).
    if M > 256 and _round_up(M, tm) // tm < 2:
        tm = _round_up(-(-M // 2), 8)
    m_pad = _round_up(M, tm)
    grid = (m_pad // tm,)

    xf = x.reshape(M, C)
    if m_pad != M:                            # only pay the pad copy when ragged
        xf = jnp.pad(xf, ((0, m_pad - M), (0, 0)))

    kernel = functools.partial(_lora_qkv_kernel, C=C, compute_dtype=compute_dtype)

    def build_and_run(resident_mode):
        def resident_spec(shape):
            if resident_mode is None:
                return pl.BlockSpec(shape, lambda i: (0, 0))
            return pl.BlockSpec(shape, lambda i: (0, 0), pipeline_mode=resident_mode)

        return pl.pallas_call(
            kernel,
            out_shape=jax.ShapeDtypeStruct((m_pad, 3 * C), out_dtype),
            grid_spec=pltpu.PrefetchScalarGridSpec(
                num_scalar_prefetch=0,
                grid=grid,
                in_specs=[
                    pl.BlockSpec((tm, C), lambda i: (i, 0)),   # x tile (pipelined)
                    resident_spec((C, 3 * C)),                 # Wqkv^T (resident)
                    resident_spec((1, 3 * C)),                 # bias
                    resident_spec((C, r2)),                    # [Aq|Av]^T
                    resident_spec((r2, 2 * C)),                # packed LoRA-B
                ],
                out_specs=pl.BlockSpec((tm, 3 * C), lambda i: (i, 0)),
            ),
            compiler_params=pltpu.CompilerParams(
                dimension_semantics=("parallel",),
                vmem_limit_bytes=vmem_budget,
            ),
        )(xf, w, bias, a_pack, b_pack)

    try:
        # Single-buffer the grid-invariant weights (frees VMEM, esp. on v7x).
        out = build_and_run(pl.Buffered(1))
    except Exception:
        # Fallback: default pipelining if this JAX/Mosaic rejects Buffered(1).
        out = build_and_run(None)

    if m_pad != M:
        out = out[:M]
    return out.reshape(B, N, 3 * C)


def lora_qkv(x, wqkv_t, bqkv, aq_t, bq_t, av_t, bv_t, *, tm=512,
             compute_dtype=jnp.bfloat16, out_dtype=None):
    """Convenience wrapper: packs weights then runs the fused kernel.

    NOTE: keep compute_dtype=bf16 on v5e/v6e/v7x (MXU is bf16-native with f32
    accumulation); the full-f32 path exists for accuracy verification.
    For repeated calls with fixed weights, call pack_lora_qkv_weights() once
    and use lora_qkv_packed() directly.
    """
    packed = pack_lora_qkv_weights(wqkv_t, bqkv, aq_t, bq_t, av_t, bv_t,
                                   compute_dtype=compute_dtype)
    return lora_qkv_packed(x, *packed, tm=tm, compute_dtype=compute_dtype,
                           out_dtype=out_dtype)


def reference(x, wqkv_t, bqkv, aq_t, bq_t, av_t, bv_t):
    """Pure-JAX f32 reference matching the PyTorch module."""
    C = x.shape[-1]
    qkv = x @ wqkv_t + bqkv
    new_q = (x @ aq_t) @ bq_t
    new_v = (x @ av_t) @ bv_t
    qkv = qkv.at[..., :C].add(new_q)
    qkv = qkv.at[..., -C:].add(new_v)
    return qkv


if __name__ == "__main__":
    # Small shapes consistent with the module: x is (B, N, C); LoRA rank r.
    B, N, C, r = 2, 8, 32, 4

    key = jax.random.PRNGKey(0)
    kx, kw, kb, kaq, kbq, kav, kbv = jax.random.split(key, 7)

    x = jax.random.normal(kx, (B, N, C), dtype=jnp.float32)

    # PyTorch nn.Linear stores W as (out_features, in_features); the kernel
    # takes the (in, out) copies so it does plain right-multiplies on the MXU.
    w_qkv = jax.random.normal(kw, (3 * C, C), dtype=jnp.float32) * 0.05
    b_qkv = jax.random.normal(kb, (3 * C,), dtype=jnp.float32) * 0.05
    w_a_q = jax.random.normal(kaq, (r, C), dtype=jnp.float32) * 0.05
    w_b_q = jax.random.normal(kbq, (C, r), dtype=jnp.float32) * 0.05
    w_a_v = jax.random.normal(kav, (r, C), dtype=jnp.float32) * 0.05
    w_b_v = jax.random.normal(kbv, (C, r), dtype=jnp.float32) * 0.05

    args = (w_qkv.T, b_qkv, w_a_q.T, w_b_q.T, w_a_v.T, w_b_v.T)
    ref = reference(x, *args)

    # Default path: bf16 operands + bf16 output, f32 MXU accumulation.
    out_bf16 = jax.block_until_ready(lora_qkv(x, *args))
    assert out_bf16.shape == (B, N, 3 * C)
    assert out_bf16.dtype == jnp.bfloat16
    assert jnp.allclose(out_bf16.astype(jnp.float32), ref, atol=2e-2, rtol=2e-2)

    # Full f32 path (tight tolerance) verifies the kernel math exactly.
    out_f32 = jax.block_until_ready(
        lora_qkv(x, *args, compute_dtype=jnp.float32, out_dtype=jnp.float32))
    assert jnp.allclose(out_f32, ref, atol=1e-4, rtol=1e-4)

    # Ragged token count exercises the pad / slice fallback path.
    x2 = jax.random.normal(jax.random.PRNGKey(1), (1, 7, C), dtype=jnp.float32)
    ref2 = reference(x2, *args)
    out2 = jax.block_until_ready(
        lora_qkv(x2, *args, compute_dtype=jnp.float32, out_dtype=jnp.float32))
    assert out2.shape == (1, 7, 3 * C)
    assert jnp.allclose(out2, ref2, atol=1e-4, rtol=1e-4)

    # Multi-block grid (M > tm) with pre-packed weights reused across calls.
    x3 = jax.random.normal(jax.random.PRNGKey(2), (2, 520, C), dtype=jnp.float32)
    ref3 = reference(x3, *args)
    packed_f32 = pack_lora_qkv_weights(*args, compute_dtype=jnp.float32)
    out3 = jax.block_until_ready(
        lora_qkv_packed(x3, *packed_f32, tm=256, compute_dtype=jnp.float32,
                        out_dtype=jnp.float32))
    assert out3.shape == (2, 520, 3 * C)
    assert jnp.allclose(out3, ref3, atol=1e-4, rtol=1e-4)

    print("KERNEL_OK")
</pallas_src>

<mosaic_0001>
module attributes {stable_mosaic.version = 11 : i64} {
  func.func @_lora_qkv_kernel(%arg0: i32, %arg1: memref<16x32xf32, #tpu.memory_space<vmem>>, %arg2: memref<32x96xbf16, #tpu.memory_space<vmem>>, %arg3: memref<1x96xf32, #tpu.memory_space<vmem>>, %arg4: memref<32x8xbf16, #tpu.memory_space<vmem>>, %arg5: memref<8x64xbf16, #tpu.memory_space<vmem>>, %arg6: memref<16x96xbf16, #tpu.memory_space<vmem>>) attributes {dimension_semantics = [#tpu.dimension_semantics<parallel>], iteration_bounds = array<i64: 1>, scalar_prefetch = 0 : i64, scratch_operands = 0 : i64, tpu.core_type = #tpu.core_type<tc>, window_params = [{transform_indices = @transform_0, window_bounds = array<i64: 16, 32>}, {pipeline_mode = #tpu.pipeline_mode<synchronous>, transform_indices = @transform_1, window_bounds = array<i64: 32, 96>}, {pipeline_mode = #tpu.pipeline_mode<synchronous>, transform_indices = @transform_2, window_bounds = array<i64: 1, 96>}, {pipeline_mode = #tpu.pipeline_mode<synchronous>, transform_indices = @transform_3, window_bounds = array<i64: 32, 8>}, {pipeline_mode = #tpu.pipeline_mode<synchronous>, transform_indices = @transform_4, window_bounds = array<i64: 8, 64>}, {transform_indices = @transform_5, window_bounds = array<i64: 16, 96>}]} {
    %c0 = arith.constant 0 : index
    %c0_0 = arith.constant 0 : index
    %0 = vector.load %arg1[%c0, %c0_0] : memref<16x32xf32, #tpu.memory_space<vmem>>, vector<16x32xf32>
    %1 = arith.truncf %0 : vector<16x32xf32> to vector<16x32xbf16>
    %c0_1 = arith.constant 0 : index
    %c0_2 = arith.constant 0 : index
    %2 = vector.load %arg2[%c0_1, %c0_2] : memref<32x96xbf16, #tpu.memory_space<vmem>>, vector<32x96xbf16>
    %cst = arith.constant dense<0.000000e+00> : vector<16x96xf32>
    %3 = tpu.matmul %1, %2, %cst {dimension_numbers = #tpu.dot_dimension_numbers<[1], [0], [0], [1], [0, 0, 1, 1], [], []>} : vector<16x32xbf16>, vector<32x96xbf16>, vector<16x96xf32> -> vector<16x96xf32>
    %c0_3 = arith.constant 0 : index
    %c0_4 = arith.constant 0 : index
    %4 = vector.load %arg3[%c0_3, %c0_4] : memref<1x96xf32, #tpu.memory_space<vmem>>, vector<1x96xf32>
    %5 = vector.broadcast %4 : vector<1x96xf32> to vector<16x96xf32>
    %6 = arith.addf %3, %5 : vector<16x96xf32>
    %c0_5 = arith.constant 0 : index
    %c0_6 = arith.constant 0 : index
    %7 = vector.load %arg4[%c0_5, %c0_6] : memref<32x8xbf16, #tpu.memory_space<vmem>>, vector<32x8xbf16>
    %cst_7 = arith.constant dense<0.000000e+00> : vector<16x8xf32>
    %8 = tpu.matmul %1, %7, %cst_7 {dimension_numbers = #tpu.dot_dimension_numbers<[1], [0], [0], [1], [0, 0, 1, 1], [], []>} : vector<16x32xbf16>, vector<32x8xbf16>, vector<16x8xf32> -> vector<16x8xf32>
    %9 = arith.truncf %8 : vector<16x8xf32> to vector<16x8xbf16>
    %c0_8 = arith.constant 0 : index
    %c0_9 = arith.constant 0 : index
    %10 = vector.load %arg5[%c0_8, %c0_9] : memref<8x64xbf16, #tpu.memory_space<vmem>>, vector<8x64xbf16>
    %cst_10 = arith.constant dense<0.000000e+00> : vector<16x64xf32>
    %11 = tpu.matmul %9, %10, %cst_10 {dimension_numbers = #tpu.dot_dimension_numbers<[1], [0], [0], [1], [0, 0, 1, 1], [], []>} : vector<16x8xbf16>, vector<8x64xbf16>, vector<16x64xf32> -> vector<16x64xf32>
    %12 = vector.extract_strided_slice %6 {offsets = [0, 0], sizes = [16, 32], strides = [1, 1]} : vector<16x96xf32> to vector<16x32xf32>
    %13 = vector.extract_strided_slice %11 {offsets = [0, 0], sizes = [16, 32], strides = [1, 1]} : vector<16x64xf32> to vector<16x32xf32>
    %14 = arith.addf %12, %13 : vector<16x32xf32>
    %15 = vector.extract_strided_slice %6 {offsets = [0, 32], sizes = [16, 32], strides = [1, 1]} : vector<16x96xf32> to vector<16x32xf32>
    %16 = vector.extract_strided_slice %6 {offsets = [0, 64], sizes = [16, 32], strides = [1, 1]} : vector<16x96xf32> to vector<16x32xf32>
    %17 = vector.extract_strided_slice %11 {offsets = [0, 32], sizes = [16, 32], strides = [1, 1]} : vector<16x64xf32> to vector<16x32xf32>
    %18 = arith.addf %16, %17 : vector<16x32xf32>
    %19 = tpu.concatenate %14, %15, %18 in 1 : vector<16x32xf32>, vector<16x32xf32>, vector<16x32xf32> -> vector<16x96xf32>
    %20 = arith.truncf %19 : vector<16x96xf32> to vector<16x96xbf16>
    %c0_11 = arith.constant 0 : index
    %c0_12 = arith.constant 0 : index
    %21 = vector.load %arg6[%c0_11, %c0_12] : memref<16x96xbf16, #tpu.memory_space<vmem>>, vector<16x96xbf16>
    tpu.vector_store %arg6[%c0_11, %c0_12], %20 {strides = array<i32>} : memref<16x96xbf16, #tpu.memory_space<vmem>>, vector<16x96xbf16>,
    return
  }
  func.func @transform_0(%arg0: i32) -> (i32, i32) {
    %c0_i32 = arith.constant 0 : i32
    %c0_i32_0 = arith.constant 0 : i32
    return %arg0, %c0_i32 : i32, i32
  }
  func.func @transform_1(%arg0: i32) -> (i32, i32) {
    %c0_i32 = arith.constant 0 : i32
    %c0_i32_0 = arith.constant 0 : i32
    %c0_i32_1 = arith.constant 0 : i32
    return %c0_i32, %c0_i32_0 : i32, i32
  }
  func.func @transform_2(%arg0: i32) -> (i32, i32) {
    %c0_i32 = arith.constant 0 : i32
    %c0_i32_0 = arith.constant 0 : i32
    %c0_i32_1 = arith.constant 0 : i32
    return %c0_i32, %c0_i32_0 : i32, i32
  }
  func.func @transform_3(%arg0: i32) -> (i32, i32) {
    %c0_i32 = arith.constant 0 : i32
    %c0_i32_0 = arith.constant 0 : i32
    %c0_i32_1 = arith.constant 0 : i32
    return %c0_i32, %c0_i32_0 : i32, i32
  }
  func.func @transform_4(%arg0: i32) -> (i32, i32) {
    %c0_i32 = arith.constant 0 : i32
    %c0_i32_0 = arith.constant 0 : i32
    %c0_i32_1 = arith.constant 0 : i32
    return %c0_i32, %c0_i32_0 : i32, i32
  }
  func.func @transform_5(%arg0: i32) -> (i32, i32) {
    %c0_i32 = arith.constant 0 : i32
    %c0_i32_0 = arith.constant 0 : i32
    return %arg0, %c0_i32 : i32, i32
  }
}

module attributes {stable_mosaic.version = 11 : i64} {
  func.func @_lora_qkv_kernel(%arg0: i32, %arg1: memref<16x32xf32, #tpu.memory_space<vmem>>, %arg2: memref<32x96xbf16, #tpu.memory_space<vmem>>, %arg3: memref<1x96xf32, #tpu.memory_space<vmem>>, %arg4: memref<32x8xbf16, #tpu.memory_space<vmem>>, %arg5: memref<8x64xbf16, #tpu.memory_space<vmem>>, %arg6: memref<16x96xbf16, #tpu.memory_space<vmem>>) attributes {dimension_semantics = [#tpu.dimension_semantics<parallel>], iteration_bounds = array<i64: 1>, scalar_prefetch = 0 : i64, scratch_operands = 0 : i64, tpu.core_type = #tpu.core_type<tc>, window_params = [{transform_indices = @transform_0, window_bounds = array<i64: 16, 32>}, {pipeline_mode = #tpu.pipeline_mode<synchronous>, transform_indices = @transform_1, window_bounds = array<i64: 32, 96>}, {pipeline_mode = #tpu.pipeline_mode<synchronous>, transform_indices = @transform_2, window_bounds = array<i64: 1, 96>}, {pipeline_mode = #tpu.pipeline_mode<synchronous>, transform_indices = @transform_3, window_bounds = array<i64: 32, 8>}, {pipeline_mode = #tpu.pipeline_mode<synchronous>, transform_indices = @transform_4, window_bounds = array<i64: 8, 64>}, {transform_indices = @transform_5, window_bounds = array<i64: 16, 96>}]} {
    %c0 = arith.constant 0 : index
    %c0_0 = arith.constant 0 : index
    %0 = vector.load %arg1[%c0, %c0_0] : memref<16x32xf32, #tpu.memory_space<vmem>>, vector<16x32xf32>
    %1 = arith.truncf %0 : vector<16x32xf32> to vector<16x32xbf16>
    %c0_1 = arith.constant 0 : index
    %c0_2 = arith.constant 0 : index
    %2 = vector.load %arg2[%c0_1, %c0_2] : memref<32x96xbf16, #tpu.memory_space<vmem>>, vector<32x96xbf16>
    %cst = arith.constant dense<0.000000e+00> : vector<16x96xf32>
    %3 = tpu.matmul %1, %2, %cst {dimension_numbers = #tpu.dot_dimension_numbers<[1], [0], [0], [1], [0, 0, 1, 1], [], []>} : vector<16x32xbf16>, vector<32x96xbf16>, vector<16x96xf32> -> vector<16x96xf32>
    %c0_3 = arith.constant 0 : index
    %c0_4 = arith.constant 0 : index
    %4 = vector.load %arg3[%c0_3, %c0_4] : memref<1x96xf32, #tpu.memory_space<vmem>>, vector<1x96xf32>
    %5 = vector.broadcast %4 : vector<1x96xf32> to vector<16x96xf32>
    %6 = arith.addf %3, %5 : vector<16x96xf32>
    %c0_5 = arith.constant 0 : index
    %c0_6 = arith.constant 0 : index
    %7 = vector.load %arg4[%c0_5, %c0_6] : memref<32x8xbf16, #tpu.memory_space<vmem>>, vector<32x8xbf16>
    %cst_7 = arith.constant dense<0.000000e+00> : vector<16x8xf32>
    %8 = tpu.matmul %1, %7, %cst_7 {dimension_numbers = #tpu.dot_dimension_numbers<[1], [0], [0], [1], [0, 0, 1, 1], [], []>} : vector<16x32xbf16>, vector<32x8xbf16>, vector<16x8xf32> -> vector<16x8xf32>
    %9 = arith.truncf %8 : vector<16x8xf32> to vector<16x8xbf16>
    %c0_8 = arith.constant 0 : index
    %c0_9 = arith.constant 0 : index
    %10 = vector.load %arg5[%c0_8, %c0_9] : memref<8x64xbf16, #tpu.memory_space<vmem>>, vector<8x64xbf16>
    %cst_10 = arith.constant dense<0.000000e+00> : vector<16x64xf32>
    %11 = tpu.matmul %9, %10, %cst_10 {dimension_numbers = #tpu.dot_dimension_numbers<[1], [0], [0], [1], [0, 0, 1, 1], [], []>} : vector<16x8xbf16>, vector<8x64xbf16>, vector<16x64xf32> -> vector<16x64xf32>
    %12 = vector.extract_strided_slice %6 {offsets = [0, 0], sizes = [16, 32], strides = [1, 1]} : vector<16x96xf32> to vector<16x32xf32>
    %13 = vector.extract_strided_slice %11 {offsets = [0, 0], sizes = [16, 32], strides = [1, 1]} : vector<16x64xf32> to vector<16x32xf32>
    %14 = arith.addf %12, %13 : vector<16x32xf32>
    %15 = vector.extract_strided_slice %6 {offsets = [0, 32], sizes = [16, 32], strides = [1, 1]} : vector<16x96xf32> to vector<16x32xf32>
    %16 = vector.extract_strided_slice %6 {offsets = [0, 64], sizes = [16, 32], strides = [1, 1]} : vector<16x96xf32> to vector<16x32xf32>
    %17 = vector.extract_strided_slice %11 {offsets = [0, 32], sizes = [16, 32], strides = [1, 1]} : vector<16x64xf32> to vector<16x32xf32>
    %18 = arith.addf %16, %17 : vector<16x32xf32>
    %19 = tpu.concatenate %14, %15, %18 in 1 : vector<16x32xf32>, vector<16x32xf32>, vector<16x32xf32> -> vector<16x96xf32>
    %20 = arith.truncf %19 : vector<16x96xf32> to vector<16x96xbf16>
    %c0_11 = arith.constant 0 : index
    %c0_12 = arith.constant 0 : index
    %21 = vector.load %arg6[%c0_11, %c0_12] : memref<16x96xbf16, #tpu.memory_space<vmem>>, vector<16x96xbf16>
    tpu.vector_store %arg6[%c0_11, %c0_12], %20 {strides = array<i32>} : memref<16x96xbf16, #tpu.memory_space<vmem>>, vector<16x96xbf16>,
    return
  }
  func.func @transform_0(%arg0: i32) -> (i32, i32) {
    %c0_i32 = arith.constant 0 : i32
    %c0_i32_0 = arith.constant 0 : i32
    return %arg0, %c0_i32 : i32, i32
  }
  func.func @transform_1(%arg0: i32) -> (i32, i32) {
    %c0_i32 = arith.constant 0 : i32
    %c0_i32_0 = arith.constant 0 : i32
    %c0_i32_1 = arith.constant 0 : i32
    return %c0_i32, %c0_i32_0 : i32, i32
  }
  func.func @transform_2(%arg0: i32) -> (i32, i32) {
    %c0_i32 = arith.constant 0 : i32
    %c0_i32_0 = arith.constant 0 : i32
    %c0_i32_1 = arith.constant 0 : i32
    return %c0_i32, %c0_i32_0 : i32, i32
  }
  func.func @transform_3(%arg0: i32) -> (i32, i32) {
    %c0_i32 = arith.constant 0 : i32
    %c0_i32_0 = arith.constant 0 : i32
    %c0_i32_1 = arith.constant 0 : i32
    return %c0_i32, %c0_i32_0 : i32, i32
  }
  func.func @transform_4(%arg0: i32) -> (i32, i32) {
    %c0_i32 = arith.constant 0 : i32
    %c0_i32_0 = arith.constant 0 : i32
    %c0_i32_1 = arith.constant 0 : i32
    return %c0_i32, %c0_i32_0 : i32, i32
  }
  func.func @transform_5(%arg0: i32) -> (i32, i32) {
    %c0_i32 = arith.constant 0 : i32
    %c0_i32_0 = arith.constant 0 : i32
    return %arg0, %c0_i32 : i32, i32
  }
}

</mosaic_0001>

<bundles_post_ra>
// kernel: tpu_custom_call.1
= control target key start
LH: loop header
LB: loop body
LE: loop exit
PB: predicated region body
PF: predicated region fallthrough
CT: control target
= control target key end

     0   :  { %10 = vsyncpa [#allocation3], 0  ;;  %s453_s0 = inlined_call_operand.vmem [shape: f32[16,32], index: 0, kind: input, shape index: {}]   ;;  %s454_s1 = inlined_call_operand.hbm [shape: bf16[32,96], index: 1, kind: input, shape index: {}]   ;;  %s455_s2 = inlined_call_operand.vmem [shape: f32[1,96], index: 2, kind: input, shape index: {}]   ;;  %s456_s3 = inlined_call_operand.vmem [shape: bf16[32,8], index: 3, kind: input, shape index: {}]   ;;  %s457_s4 = inlined_call_operand.vmem [shape: bf16[8,64], index: 4, kind: input, shape index: {}]   ;;  %s458_s5 = inlined_call_operand.hbm [shape: bf16[16,96], index: 5, kind: output, shape index: {}]  }
   0x1   :  { %11 = vsyncpa [#allocation4], 0  ;;  %s361_s18 = smov [#allocation2]   ;;  %s313_s22 = scalar_lea.hbm %s454_s1, 256 }
   0x2   :  { %s19_s19 = sshll.u32 %s361_s18, 4  ;;  %p314_p0 = scmp.ne.s32.totalorder %s454_s1, %s313_s22  ;;  %s20_s19 = int_to_ptr.vmem [resolvable:$true] %s19_s19 }
   0x3   :  { %p317_p1 = scmp.lt.u32.totalorder %s313_s22, %s454_s1 }
   0x5   :  { %p319_p2 = pnand %p317_p1, %p314_p0 }
   0x7   :  { %322 = shalt.err (!%p319_p2)
}
   0x8   :  { %s323_s27 = scalar_lea.vmem %s20_s19, 256  ;;  %p328_p4 = scmp.lt.s32.totalorder %s20_s19, %s20_s19 }
   0x9   :  { %p324_p3 = scmp.ne.s32.totalorder %s20_s19, %s323_s27  ;;  %p329_p5 = scmp.lt.s32.totalorder %s323_s27, %s323_s27 }
   0xb   :  { %p330_p6 = por %p329_p5, %p328_p4 }
   0xd   :  { %p331_p7 = pnand %p330_p6, %p324_p3 }
   0xf   :  { %334 = shalt.err (!%p331_p7)
}
  0x10   :  { %s362_s28 = smov 64   ;;  %s363_s29 = smov 4  }
  0x11   :  { %25 = dma.hbm_to_vmem [thread:$0]  %s454_s1, 256, %s20_s19, [#allocation3], %s362_s28, %s362_s28, %s363_s29  }
  0x12   :  { %357 = dma.done.wait [#allocation3], 256  }
  0x13   :  { %358 = vsyncadd [#allocation3], 4294967040  ;;  %v364_v0 = vmov 0.0   ;;  %vm365_vm0 = vmmov 0   ;;  %v309_v1 = vld [vmem:[%s456_s3] sm:$0xff]   ;;  %v310_v2 = vld [vmem:[%s456_s3 + $0x8] sm:$0xff]  }
  0x14   :  { %288 = vmatprep.subr.bf16.mxu1 %v364_v0  ;;  %292 = vmatprep.mubr.msk.bf16.mxu1 %vm365_vm0, %v364_v0  ;;  %v36_v3 = vld [vmem:[%s453_s0] sm:$0xff]  ;;  %v37_v4 = vld [vmem:[%s453_s0 + $0x8] sm:$0xff]  ;;  %vm62_vm1 = vcmask 261120   ;;  %vm170_vm2 = vcmask 1043456   ;;  %vm166_vm3 = vcmask 64512   ;;  %vm229_vm4 = vcmask 523264  }
  0x15   :  { %280 = vmatprep.subr.bf16.mxu0 %v364_v0  ;;  %284 = vmatprep.mubr.msk.bf16.mxu0 %vm365_vm0, %v364_v0  ;;  %v311_v5 = vld [vmem:[#allocation2] sm:$0xff]   ;;  %v38_v6 = vpack.c.bf16 %v37_v4, %v36_v3  ;;  %v312_v7 = vld [vmem:[#allocation2 + $0x8] sm:$0xff]   ;;  %vm240_vm5 = vcmask 781312  }
  0x16   :  { %289 = vmatpush3.bf16.msra.mxu1 %v309_v1  ;;  %281 = vmatpush3.bf16.msra.mxu0 %v311_v5  ;;  %v165_v8 = vld [vmem:[%s457_s4] sm:$0xf]  ;;  %s366_s4 = smov 32  }
  0x17   :  { %290 = vmatprep.subr.bf16.mxu1 %v364_v0  ;;  %282 = vmatprep.subr.bf16.mxu0 %v364_v0  ;;  %v172_v9 = vsel %vm170_vm2, %v165_v8, 0  ;;  %v260_v19 = vld [vmem:[%s455_s2] ss:$0 sm:$0xff]  ;;  %s367_s2 = smov [#allocation5]  }
  0x18   :  { %s248_s16 = sshll.u32 %s367_s2, 4  ;;  %s249_s16 = int_to_ptr.vmem [resolvable:$true] %s248_s16 }
  0x19   :  { %s335_s17 = scalar_lea.vmem %s249_s16, 128  ;;  %p340_p9 = scmp.lt.s32.totalorder %s249_s16, %s249_s16 }
  0x1a   :  { %291 = vmatpush3.bf16.msra.mxu1 %v310_v2  ;;  %283 = vmatpush3.bf16.msra.mxu0 %v312_v7  ;;  %p336_p8 = scmp.ne.s32.totalorder %s249_s16, %s335_s17  ;;  %p341_p10 = scmp.lt.s32.totalorder %s335_s17, %s335_s17 }
  0x1b   :  { %296 = vmatprep.subr.bf16.mxu0 %v364_v0 }
  0x1c   :  { %p342_p11 = por %p341_p10, %p340_p9 }
  0x1d   :  { %293 = vmatmul.mubr.msk.bf16.vlgmr.msra.gmra.mrb[0].mxu1 %vm62_vm1, %v38_v6  ;;  %285 = vmatmul.mubr.msk.bf16.vlgmr.msra.gmra.mrb[0].mxu0 %vm62_vm1, %v38_v6 }
  0x1e   :  { %297 = vmatpush3.bf16.msra.mxu0 %v172_v9  ;;  %298 = vmatprep.mubr.msk.bf16.mxu0 %vm365_vm0, %v364_v0  ;;  %p343_p12 = pnand %p342_p11, %p336_p8 }
  0xf0   :  { %v157_v10 = vpop.f32.mrb[0].mxu1  ;;  %v100_v15 = vpop.f32.mrb[0].mxu0 }
  0xf1   :  { %v294_v11 = vpop.f32.mrb[1].mxu1  ;;  %v286_v16 = vpop.f32.mrb[1].mxu0  ;;  %v101_v20 = vadd.f32 %v260_v19, %v100_v15 }
  0xf2   :  { %v160_v12 = vpop.f32.mrb[2].mxu1  ;;  %v103_v17 = vpop.f32.mrb[2].mxu0 }
  0xf3   :  { %v164_v13 = vpack.c.bf16 %v160_v12, %v157_v10  ;;  %v295_v14 = vpop.f32.mrb[3].mxu1  ;;  %v287_v18 = vpop.f32.mrb[3].mxu0  ;;  %v104_v22 = vadd.f32 %v260_v19, %v103_v17 }
  0xf5   :  { %299 = vmatmul.mubr.msk.bf16.vlgmr.msra.gmra.mrb[4].mxu0 %vm166_vm3, %v164_v13 }
 0x1c8   :  { %v208_v21 = vpop.f32.mrb[4].mxu0 }
 0x1c9   :  { %v215_v23 = vadd.f32 %v208_v21, %v101_v20  ;;  %219 = vrot.lane.b32.xlu0 %v208_v21, %s366_s4  ;;  %v300_v24 = vpop.f32.mrb[5].mxu0 }
 0x1ca   :  { %v211_v25 = vpop.f32.mrb[6].mxu0 }
 0x1cb   :  { %v227_v26 = vsel %vm62_vm1, %v215_v23, %v101_v20  ;;  %v216_v27 = vadd.f32 %v211_v25, %v104_v22  ;;  %v301_v28 = vpop.f32.mrb[7].mxu0 }
 0x1cd   :  { %v228_v29 = vsel %vm62_vm1, %v216_v27, %v104_v22  ;;  %221 = vrot.lane.b32.xlu0 %v211_v25, %s366_s4 }
 0x23b   :  { %v220_v30 = vpop.permute.xlu0 %219 }
 0x23c   :  { %v225_v31 = vadd.f32 %v220_v30, %v101_v20 }
 0x23e   :  { %v230_v32 = vsel %vm229_vm4, %v227_v26, %v225_v31 }
 0x23f   :  { %v270_v33 = vpack.c.bf16 %v230_v32, %v230_v32  ;;  %v222_v34 = vpop.permute.xlu0 %221 }
 0x240   :  { %v226_v35 = vadd.f32 %v222_v34, %v104_v22 }
 0x241   :  { %241 = vst.msk [vmem:[#allocation5] sm:$0xf] %vm240_vm5, %v270_v33 }
 0x242   :  { %v231_v36 = vsel %vm229_vm4, %v228_v29, %v226_v35 }
 0x243   :  { %v271_v37 = vpack.c.bf16 %v231_v36, %v231_v36 }
 0x245   :  { %242 = vst.msk [vmem:[#allocation5 + $0x4] sm:$0xf] %vm240_vm5, %v271_v37 }
 0x246   :  { %346 = shalt.err (!%p343_p12)
}
 0x247   :  { %s347_s20 = scalar_lea.hbm %s458_s5, 128 }
 0x248   :  { %p348_p13 = scmp.ne.s32.totalorder %s458_s5, %s347_s20  ;;  %p351_p0 = scmp.lt.u32.totalorder %s347_s20, %s458_s5 }
 0x24a   :  { %p353_p1 = pnand %p351_p0, %p348_p13 }
 0x24c   :  { %356 = shalt.err (!%p353_p1)
}
 0x24d   :  { %254 = dma.vmem_to_hbm [thread:$0]  %s249_s16, 128, %s458_s5, [#allocation4], %s362_s28, %s362_s28, %s363_s29  }
 0x24e   :  { %359 = dma.done.wait [#allocation4], 128  }
 0x24f   :  { %360 = vsyncadd [#allocation4], 4294967168 }
 0x250   :  { %258 = vsyncpa [#allocation3], 1 }
 0x251   :  { %259 = vsyncpa [#allocation4], 1 }

// kernel: tpu_custom_call.1
= control target key start
LH: loop header
LB: loop body
LE: loop exit
PB: predicated region body
PF: predicated region fallthrough
CT: control target
= control target key end

     0   :  { %10 = vsyncpa [#allocation3], 0  ;;  %s453_s0 = inlined_call_operand.vmem [shape: f32[16,32], index: 0, kind: input, shape index: {}]   ;;  %s454_s1 = inlined_call_operand.hbm [shape: bf16[32,96], index: 1, kind: input, shape index: {}]   ;;  %s455_s2 = inlined_call_operand.vmem [shape: f32[1,96], index: 2, kind: input, shape index: {}]   ;;  %s456_s3 = inlined_call_operand.vmem [shape: bf16[32,8], index: 3, kind: input, shape index: {}]   ;;  %s457_s4 = inlined_call_operand.vmem [shape: bf16[8,64], index: 4, kind: input, shape index: {}]   ;;  %s458_s5 = inlined_call_operand.hbm [shape: bf16[16,96], index: 5, kind: output, shape index: {}]  }
   0x1   :  { %11 = vsyncpa [#allocation4], 0  ;;  %s361_s18 = smov [#allocation2]   ;;  %s313_s22 = scalar_lea.hbm %s454_s1, 256 }
   0x2   :  { %s19_s19 = sshll.u32 %s361_s18, 4  ;;  %p314_p0 = scmp.ne.s32.totalorder %s454_s1, %s313_s22  ;;  %s20_s19 = int_to_ptr.vmem [resolvable:$true] %s19_s19 }
   0x3   :  { %p317_p1 = scmp.lt.u32.totalorder %s313_s22, %s454_s1 }
   0x5   :  { %p319_p2 = pnand %p317_p1, %p314_p0 }
   0x7   :  { %322 = shalt.err (!%p319_p2)
}
   0x8   :  { %s323_s27 = scalar_lea.vmem %s20_s19, 256  ;;  %p328_p4 = scmp.lt.s32.totalorder %s20_s19, %s20_s19 }
   0x9   :  { %p324_p3 = scmp.ne.s32.totalorder %s20_s19, %s323_s27  ;;  %p329_p5 = scmp.lt.s32.totalorder %s323_s27, %s323_s27 }
   0xb   :  { %p330_p6 = por %p329_p5, %p328_p4 }
   0xd   :  { %p331_p7 = pnand %p330_p6, %p324_p3 }
   0xf   :  { %334 = shalt.err (!%p331_p7)
}
  0x10   :  { %s362_s28 = smov 64   ;;  %s363_s29 = smov 4  }
  0x11   :  { %25 = dma.hbm_to_vmem [thread:$0]  %s454_s1, 256, %s20_s19, [#allocation3], %s362_s28, %s362_s28, %s363_s29  }
  0x12   :  { %357 = dma.done.wait [#allocation3], 256  }
  0x13   :  { %358 = vsyncadd [#allocation3], 4294967040  ;;  %v364_v0 = vmov 0.0   ;;  %vm365_vm0 = vmmov 0   ;;  %v309_v1 = vld [vmem:[%s456_s3] sm:$0xff]   ;;  %v310_v2 = vld [vmem:[%s456_s3 + $0x8] sm:$0xff]  }
  0x14   :  { %288 = vmatprep.subr.bf16.mxu1 %v364_v0  ;;  %292 = vmatprep.mubr.msk.bf16.mxu1 %vm365_vm0, %v364_v0  ;;  %v36_v3 = vld [vmem:[%s453_s0] sm:$0xff]  ;;  %v37_v4 = vld [vmem:[%s453_s0 + $0x8] sm:$0xff]  ;;  %vm62_vm1 = vcmask 261120   ;;  %vm170_vm2 = vcmask 1043456   ;;  %vm166_vm3 = vcmask 64512   ;;  %vm229_vm4 = vcmask 523264  }
  0x15   :  { %280 = vmatprep.subr.bf16.mxu0 %v364_v0  ;;  %284 = vmatprep.mubr.msk.bf16.mxu0 %vm365_vm0, %v364_v0  ;;  %v311_v5 = vld [vmem:[#allocation2] sm:$0xff]   ;;  %v38_v6 = vpack.c.bf16 %v37_v4, %v36_v3  ;;  %v312_v7 = vld [vmem:[#allocation2 + $0x8] sm:$0xff]   ;;  %vm240_vm5 = vcmask 781312  }
  0x16   :  { %289 = vmatpush3.bf16.msra.mxu1 %v309_v1  ;;  %281 = vmatpush3.bf16.msra.mxu0 %v311_v5  ;;  %v165_v8 = vld [vmem:[%s457_s4] sm:$0xf]  ;;  %s366_s4 = smov 32  }
  0x17   :  { %290 = vmatprep.subr.bf16.mxu1 %v364_v0  ;;  %282 = vmatprep.subr.bf16.mxu0 %v364_v0  ;;  %v172_v9 = vsel %vm170_vm2, %v165_v8, 0  ;;  %v260_v19 = vld [vmem:[%s455_s2] ss:$0 sm:$0xff]  ;;  %s367_s2 = smov [#allocation5]  }
  0x18   :  { %s248_s16 = sshll.u32 %s367_s2, 4  ;;  %s249_s16 = int_to_ptr.vmem [resolvable:$true] %s248_s16 }
  0x19   :  { %s335_s17 = scalar_lea.vmem %s249_s16, 128  ;;  %p340_p9 = scmp.lt.s32.totalorder %s249_s16, %s249_s16 }
  0x1a   :  { %291 = vmatpush3.bf16.msra.mxu1 %v310_v2  ;;  %283 = vmatpush3.bf16.msra.mxu0 %v312_v7  ;;  %p336_p8 = scmp.ne.s32.totalorder %s249_s16, %s335_s17  ;;  %p341_p10 = scmp.lt.s32.totalorder %s335_s17, %s335_s17 }
  0x1b   :  { %296 = vmatprep.subr.bf16.mxu0 %v364_v0 }
  0x1c   :  { %p342_p11 = por %p341_p10, %p340_p9 }
  0x1d   :  { %293 = vmatmul.mubr.msk.bf16.vlgmr.msra.gmra.mrb[0].mxu1 %vm62_vm1, %v38_v6  ;;  %285 = vmatmul.mubr.msk.bf16.vlgmr.msra.gmra.mrb[0].mxu0 %vm62_vm1, %v38_v6 }
  0x1e   :  { %297 = vmatpush3.bf16.msra.mxu0 %v172_v9  ;;  %298 = vmatprep.mubr.msk.bf16.mxu0 %vm365_vm0, %v364_v0  ;;  %p343_p12 = pnand %p342_p11, %p336_p8 }
  0xf0   :  { %v157_v10 = vpop.f32.mrb[0].mxu1  ;;  %v100_v15 = vpop.f32.mrb[0].mxu0 }
  0xf1   :  { %v294_v11 = vpop.f32.mrb[1].mxu1  ;;  %v286_v16 = vpop.f32.mrb[1].mxu0  ;;  %v101_v20 = vadd.f32 %v260_v19, %v100_v15 }
  0xf2   :  { %v160_v12 = vpop.f32.mrb[2].mxu1  ;;  %v103_v17 = vpop.f32.mrb[2].mxu0 }
  0xf3   :  { %v164_v13 = vpack.c.bf16 %v160_v12, %v157_v10  ;;  %v295_v14 = vpop.f32.mrb[3].mxu1  ;;  %v287_v18 = vpop.f32.mrb[3].mxu0  ;;  %v104_v22 = vadd.f32 %v260_v19, %v103_v17 }
  0xf5   :  { %299 = vmatmul.mubr.msk.bf16.vlgmr.msra.gmra.mrb[4].mxu0 %vm166_vm3, %v164_v13 }
 0x1c8   :  { %v208_v21 = vpop.f32.mrb[4].mxu0 }
 0x1c9   :  { %v215_v23 = vadd.f32 %v208_v21, %v101_v20  ;;  %219 = vrot.lane.b32.xlu0 %v208_v21, %s366_s4  ;;  %v300_v24 = vpop.f32.mrb[5].mxu0 }
 0x1ca   :  { %v211_v25 = vpop.f32.mrb[6].mxu0 }
 0x1cb   :  { %v227_v26 = vsel %vm62_vm1, %v215_v23, %v101_v20  ;;  %v216_v27 = vadd.f32 %v211_v25, %v104_v22  ;;  %v301_v28 = vpop.f32.mrb[7].mxu0 }
 0x1cd   :  { %v228_v29 = vsel %vm62_vm1, %v216_v27, %v104_v22  ;;  %221 = vrot.lane.b32.xlu0 %v211_v25, %s366_s4 }
 0x23b   :  { %v220_v30 = vpop.permute.xlu0 %219 }
 0x23c   :  { %v225_v31 = vadd.f32 %v220_v30, %v101_v20 }
 0x23e   :  { %v230_v32 = vsel %vm229_vm4, %v227_v26, %v225_v31 }
 0x23f   :  { %v270_v33 = vpack.c.bf16 %v230_v32, %v230_v32  ;;  %v222_v34 = vpop.permute.xlu0 %221 }
 0x240   :  { %v226_v35 = vadd.f32 %v222_v34, %v104_v22 }
 0x241   :  { %241 = vst.msk [vmem:[#allocation5] sm:$0xf] %vm240_vm5, %v270_v33 }
 0x242   :  { %v231_v36 = vsel %vm229_vm4, %v228_v29, %v226_v35 }
 0x243   :  { %v271_v37 = vpack.c.bf16 %v231_v36, %v231_v36 }
 0x245   :  { %242 = vst.msk [vmem:[#allocation5 + $0x4] sm:$0xf] %vm240_vm5, %v271_v37 }
 0x246   :  { %346 = shalt.err (!%p343_p12)
}
 0x247   :  { %s347_s20 = scalar_lea.hbm %s458_s5, 128 }
 0x248   :  { %p348_p13 = scmp.ne.s32.totalorder %s458_s5, %s347_s20  ;;  %p351_p0 = scmp.lt.u32.totalorder %s347_s20, %s458_s5 }
 0x24a   :  { %p353_p1 = pnand %p351_p0, %p348_p13 }
 0x24c   :  { %356 = shalt.err (!%p353_p1)
}
 0x24d   :  { %254 = dma.vmem_to_hbm [thread:$0]  %s249_s16, 128, %s458_s5, [#allocation4], %s362_s28, %s362_s28, %s363_s29  }
 0x24e   :  { %359 = dma.done.wait [#allocation4], 128  }
 0x24f   :  { %360 = vsyncadd [#allocation4], 4294967168 }
 0x250   :  { %258 = vsyncpa [#allocation3], 1 }
 0x251   :  { %259 = vsyncpa [#allocation4], 1 }

</bundles_post_ra>
